<compile_context>
chip_gen: v5e
topology: v5e:2x2
jax: 0.10.0
libtpu: 0.0.40
codegen_flags: <defaults>
</compile_context>

<pallas_src>
import jax
import jax.numpy as jnp
from jax.experimental import pallas as pl
from jax.experimental.pallas import tpu as pltpu

LANES = 128
ACC_ROWS = 256   # accumulator rows (multiple of 8/16/32 sublane minimums)


def _round_up(n, m):
    return ((n + m - 1) // m) * m


def _device_defaults():
    """(max_tile_rows, n_core_split) chosen per TPU generation."""
    kind = ""
    try:
        kind = jax.devices()[0].device_kind.lower()
    except Exception:
        pass
    if "v7" in kind:
        return 8192, 2      # 4 MiB/input block; shard grid over both TensorCores
    if "v6" in kind:
        return 8192, 1      # 4 MiB/input block; single TC
    if "v5" in kind and ("lite" in kind or "5e" in kind):
        return 4096, 1      # 2 MiB/input block; fits v5e's 16 MiB scoped VMEM
    return 4096, 1          # conservative default for unknown chips


def _make_kernel(rows, tile_rows, acc_rows, num_blocks, steps_per_core,
                 ragged, may_overrun):
    folds = tile_rows // acc_rows

    def fold(p):
        if folds == 1:
            return p
        # Reshape stays on (8,128) tile boundaries -> layout-free; pure VPU adds.
        return p.reshape(folds, acc_rows, LANES).sum(axis=0)

    def kernel(x_ref, w_ref, o_ref, acc_ref):
        c = pl.program_id(0)          # per-core ("parallel") axis
        i = pl.program_id(1)          # reduction axis

        @pl.when(i == 0)
        def _():
            acc_ref[...] = jnp.zeros_like(acc_ref)

        blk = c * steps_per_core + i  # logical (unclamped) block index
        prod = x_ref[...].astype(jnp.float32) * w_ref[...].astype(jnp.float32)

        def add_full():
            acc_ref[...] += fold(prod)

        def add_masked():
            row0 = blk * tile_rows
            row_ids = row0 + jax.lax.broadcasted_iota(
                jnp.int32, (tile_rows, 1), 0)
            # NOTE: must stay a *select* -- out-of-range rows of the ragged
            # block hold stale VMEM data (possibly NaN/Inf); multiply-by-mask
            # would propagate them.
            acc_ref[...] += fold(jnp.where(row_ids < rows, prod, 0.0))

        last = num_blocks - 1
        if ragged or may_overrun:
            @pl.when(blk < last)
            def _():
                add_full()

            @pl.when(blk == last)
            def _():
                if ragged:
                    add_masked()
                else:
                    add_full()
            # blk > last (only when may_overrun): contributes nothing.
        else:
            add_full()

        @pl.when(i == steps_per_core - 1)
        def _():
            o_ref[...] = jnp.sum(acc_ref[...]).reshape(1, 1)

    return kernel


def weighted_sum(x, weight, *, tile_rows=None, n_split=None):
    """Computes (x * weight).sum() as a float32 scalar via a Pallas kernel."""
    assert x.shape == weight.shape, "weight must match x shape (no broadcasting)"

    total = x.size
    if total == 0:
        return jnp.float32(0.0)

    d_tile, d_split = _device_defaults()
    if tile_rows is None:
        tile_rows = d_tile
    if n_split is None:
        n_split = d_split

    xf = x.reshape(-1)
    wf = weight.reshape(-1)

    rows = total // LANES
    tail = total - rows * LANES

    # Lane tail (< 128 elements) handled in plain JAX.
    if tail:
        tail_sum = jnp.sum(xf[rows * LANES:].astype(jnp.float32)
                           * wf[rows * LANES:].astype(jnp.float32))
    else:
        tail_sum = jnp.float32(0.0)

    if rows == 0:
        return tail_sum

    x2 = xf[: rows * LANES].reshape(rows, LANES)
    w2 = wf[: rows * LANES].reshape(rows, LANES)

    # dtype-aware sublane minimum: 8 rows (4B), 16 rows (2B), 32 rows (1B).
    itemsize = min(jnp.dtype(x.dtype).itemsize, jnp.dtype(weight.dtype).itemsize)
    sub = {4: 8, 2: 16, 1: 32}.get(int(itemsize), 8)

    tile_rows = min(tile_rows, _round_up(rows, sub))
    if tile_rows > ACC_ROWS:
        tile_rows = _round_up(tile_rows, ACC_ROWS)  # ACC_ROWS is a multiple of sub
        acc_rows = ACC_ROWS
    else:
        acc_rows = tile_rows

    num_blocks = pl.cdiv(rows, tile_rows)
    n_split = max(1, min(n_split, num_blocks))
    steps_per_core = pl.cdiv(num_blocks, n_split)

    ragged = (rows % tile_rows) != 0
    may_overrun = (n_split > 1) and (num_blocks % n_split != 0)

    if may_overrun:
        def in_map(c, i):
            # Clamp so no fully-out-of-bounds block DMA is issued; the kernel
            # skips compute for those logical blocks.
            return (jnp.minimum(c * steps_per_core + i, num_blocks - 1), 0)
    else:
        def in_map(c, i):
            return (c * steps_per_core + i, 0)

    out = pl.pallas_call(
        _make_kernel(rows, tile_rows, acc_rows, num_blocks, steps_per_core,
                     ragged, may_overrun),
        out_shape=jax.ShapeDtypeStruct((n_split, 1), jnp.float32),
        grid_spec=pltpu.PrefetchScalarGridSpec(
            num_scalar_prefetch=0,
            grid=(n_split, steps_per_core),
            in_specs=[
                pl.BlockSpec((tile_rows, LANES), in_map),
                pl.BlockSpec((tile_rows, LANES), in_map),
            ],
            out_specs=pl.BlockSpec((1, 1), lambda c, i: (c, 0)),
            scratch_shapes=[pltpu.VMEM((acc_rows, LANES), jnp.float32)],
        ),
        compiler_params=pltpu.CompilerParams(
            dimension_semantics=("parallel", "arbitrary"),
            # Only relevant when a lane tail forced a prefix slice: let XLA
            # fuse that slice into the call instead of materializing a copy.
            allow_input_fusion=[True, True] if tail else None,
        ),
    )(x2, w2)

    return jnp.sum(out) + tail_sum


if __name__ == "__main__":
    # Deterministic inputs consistent with the module: x and weight same shape.
    key = jax.random.PRNGKey(0)
    kx, kw = jax.random.split(key)

    shape = (2, 4, 16, 16)  # NCHW (N=2, C=4, H=16, W=16)
    x = jax.random.normal(kx, shape, dtype=jnp.float32)
    weight = jax.random.normal(kw, shape, dtype=jnp.float32)  # module's `weight`

    v = weighted_sum(x, weight)
    v = jax.block_until_ready(v)

    # Correctness check against plain JAX reference.
    ref = jnp.sum(x * weight)
    assert jnp.allclose(v, ref, rtol=1e-5, atol=1e-5), (v, ref)

    print("KERNEL_OK")
</pallas_src>

<mosaic_0001>
module attributes {stable_mosaic.version = 11 : i64} {
  func.func @kernel(%arg0: i32, %arg1: i32, %arg2: memref<16x128xf32, #tpu.memory_space<vmem>>, %arg3: memref<16x128xf32, #tpu.memory_space<vmem>>, %arg4: memref<1x1xf32, #tpu.memory_space<vmem>>, %arg5: memref<16x128xf32, #tpu.memory_space<vmem>>) attributes {dimension_semantics = [#tpu.dimension_semantics<parallel>, #tpu.dimension_semantics<arbitrary>], iteration_bounds = array<i64: 1, 1>, scalar_prefetch = 0 : i64, scratch_operands = 1 : i64, tpu.core_type = #tpu.core_type<tc>, window_params = [{transform_indices = @transform_0, window_bounds = array<i64: 16, 128>}, {transform_indices = @transform_1, window_bounds = array<i64: 16, 128>}, {transform_indices = @transform_2, window_bounds = array<i64: 1, 1>}]} {
    %c0_i32 = arith.constant 0 : i32
    %0 = arith.cmpi eq, %arg1, %c0_i32 : i32
    %1 = arith.extui %0 : i1 to i32
    %c0_i32_0 = arith.constant 0 : i32
    %2 = arith.cmpi ne, %1, %c0_i32_0 : i32
    scf.if %2 {
      %cst = arith.constant 0.000000e+00 : f32
      %12 = vector.broadcast %cst : f32 to vector<16x128xf32>
      %c0_10 = arith.constant 0 : index
      %c0_11 = arith.constant 0 : index
      %13 = vector.load %arg5[%c0_10, %c0_11] : memref<16x128xf32, #tpu.memory_space<vmem>>, vector<16x128xf32>
      tpu.vector_store %arg5[%c0_10, %c0_11], %12 {strides = array<i32>} : memref<16x128xf32, #tpu.memory_space<vmem>>, vector<16x128xf32>,
    } else {
    }
    %c0 = arith.constant 0 : index
    %c0_1 = arith.constant 0 : index
    %3 = vector.load %arg2[%c0, %c0_1] : memref<16x128xf32, #tpu.memory_space<vmem>>, vector<16x128xf32>
    %c0_2 = arith.constant 0 : index
    %c0_3 = arith.constant 0 : index
    %4 = vector.load %arg3[%c0_2, %c0_3] : memref<16x128xf32, #tpu.memory_space<vmem>>, vector<16x128xf32>
    %5 = arith.mulf %3, %4 : vector<16x128xf32>
    %c0_4 = arith.constant 0 : index
    %c0_5 = arith.constant 0 : index
    %6 = vector.load %arg5[%c0_4, %c0_5] : memref<16x128xf32, #tpu.memory_space<vmem>>, vector<16x128xf32>
    %7 = arith.addf %6, %5 : vector<16x128xf32>
    %c0_6 = arith.constant 0 : index
    %c0_7 = arith.constant 0 : index
    %8 = vector.load %arg5[%c0_6, %c0_7] : memref<16x128xf32, #tpu.memory_space<vmem>>, vector<16x128xf32>
    tpu.vector_store %arg5[%c0_6, %c0_7], %7 {strides = array<i32>} : memref<16x128xf32, #tpu.memory_space<vmem>>, vector<16x128xf32>,
    %c0_i32_8 = arith.constant 0 : i32
    %9 = arith.cmpi eq, %arg1, %c0_i32_8 : i32
    %10 = arith.extui %9 : i1 to i32
    %c0_i32_9 = arith.constant 0 : i32
    %11 = arith.cmpi ne, %10, %c0_i32_9 : i32
    scf.if %11 {
      %c0_10 = arith.constant 0 : index
      %c0_11 = arith.constant 0 : index
      %12 = vector.load %arg5[%c0_10, %c0_11] : memref<16x128xf32, #tpu.memory_space<vmem>>, vector<16x128xf32>
      %13 = vector.shape_cast %12 : vector<16x128xf32> to vector<1x16x128xf32>
      %cst = arith.constant dense<0.000000e+00> : vector<1xf32>
      %14 = vector.multi_reduction <add>, %13, %cst [1, 2] : vector<1x16x128xf32> to vector<1xf32>
      %15 = vector.shape_cast %14 : vector<1xf32> to vector<1x1x1xf32>
      %16 = vector.extract %15[0, 0, 0] : f32 from vector<1x1x1xf32>
      %17 = vector.broadcast %16 : f32 to vector<1x1xf32>
      %c0_12 = arith.constant 0 : index
      %c0_13 = arith.constant 0 : index
      %18 = vector.load %arg4[%c0_12, %c0_13] : memref<1x1xf32, #tpu.memory_space<vmem>>, vector<1x1xf32>
      tpu.vector_store %arg4[%c0_12, %c0_13], %17 {strides = array<i32>} : memref<1x1xf32, #tpu.memory_space<vmem>>, vector<1x1xf32>,
    } else {
    }
    return
  }
  func.func @transform_0(%arg0: i32, %arg1: i32) -> (i32, i32) {
    %c1_i32 = arith.constant 1 : i32
    %0 = arith.muli %arg0, %c1_i32 : i32
    %1 = arith.addi %0, %arg1 : i32
    %c0_i32 = arith.constant 0 : i32
    %c0_i32_0 = arith.constant 0 : i32
    return %1, %c0_i32 : i32, i32
  }
  func.func @transform_1(%arg0: i32, %arg1: i32) -> (i32, i32) {
    %c1_i32 = arith.constant 1 : i32
    %0 = arith.muli %arg0, %c1_i32 : i32
    %1 = arith.addi %0, %arg1 : i32
    %c0_i32 = arith.constant 0 : i32
    %c0_i32_0 = arith.constant 0 : i32
    return %1, %c0_i32 : i32, i32
  }
  func.func @transform_2(%arg0: i32, %arg1: i32) -> (i32, i32) {
    %c0_i32 = arith.constant 0 : i32
    %c0_i32_0 = arith.constant 0 : i32
    return %arg0, %c0_i32 : i32, i32
  }
}

</mosaic_0001>

<bundles_post_ra>
// kernel: tpu_custom_call.1
= control target key start
LH: loop header
LB: loop body
LE: loop exit
PB: predicated region body
PF: predicated region fallthrough
CT: control target
= control target key end

     0   :  { %7 = vsyncpa [#allocation4], 0  ;;  %s224_s0 = inlined_call_operand.hbm [shape: f32[16,128], index: 0, kind: input, shape index: {}]   ;;  %s225_s1 = inlined_call_operand.hbm [shape: f32[16,128], index: 1, kind: input, shape index: {}]   ;;  %s226_s2 = inlined_call_operand.hbm [shape: f32[1,1], index: 2, kind: output, shape index: {}]  }
   0x1   :  { %8 = vsyncpa [#allocation7], 0 }
   0x2   :  { %9 = vsyncpa [#allocation5], 0  ;;  %s18_s11 = sshll.u32 %s224_s0, 4  ;;  %s195_s12 = smov [#allocation3]   ;;  %s19_s11 = int_to_ptr.hbm [resolvable:$true] %s18_s11 }
   0x3   :  { %s20_s13 = sshll.u32 %s195_s12, 4  ;;  %s35_s16 = sshll.u32 %s225_s1, 4  ;;  %s21_s13 = int_to_ptr.vmem [resolvable:$true] %s20_s13  ;;  %s36_s16 = int_to_ptr.hbm [resolvable:$true] %s35_s16 }
   0x4   :  { %s196_s17 = smov 128   ;;  %s197_s18 = smov 8  }
   0x5   :  { %26 = dma.hbm_to_vmem [thread:$0]  %s19_s11, 256, %s21_s13, [#allocation4], %s196_s17, %s196_s17, %s197_s18  }
   0x6   :  { %s198_s19 = smov [#allocation6]  }
   0x7   :  { %s37_s20 = sshll.u32 %s198_s19, 4  ;;  %s38_s20 = int_to_ptr.vmem [resolvable:$true] %s37_s20 }
   0x8   :  { %43 = dma.hbm_to_vmem [thread:$0]  %s36_s16, 256, %s38_s20, [#allocation7], %s196_s17, %s196_s17, %s197_s18  }
   0x9   :  { %189 = dma.done.wait [#allocation4], 256  }
   0xa   :  { %190 = vsyncadd [#allocation4], 4294967040 }
   0xb   :  { %191 = dma.done.wait [#allocation7], 256  }
   0xc   :  { %192 = vsyncadd [#allocation7], 4294967040  ;;  %v62_v0 = vld [vmem:[#allocation3] sm:$0xff]  ;;  %v63_v1 = vld [vmem:[#allocation3 + $0x8] sm:$0xff]  ;;  %s199_s0 = smov [#allocation8]   ;;  %s99_s23 = sshll.u32 %s226_s2, 4  ;;  %s100_s23 = int_to_ptr.hbm [resolvable:$true] %s99_s23 }
   0xd   :  { %v64_v2 = vld [vmem:[#allocation6] sm:$0xff]  ;;  %v65_v3 = vld [vmem:[#allocation6 + $0x8] sm:$0xff]  ;;  %s97_s1 = sshll.u32 %s199_s0, 4  ;;  %vm90_vm0 = vcmask 0   ;;  %s98_s1 = int_to_ptr.vmem [resolvable:$true] %s97_s1 }
   0xe   :  { %v66_v4 = vmul.f32 %v64_v2, %v62_v0  ;;  %v67_v5 = vmul.f32 %v65_v3, %v63_v1 }
  0x10   :  { %v79_v6 = vadd.f32 %v67_v5, %v66_v4 }
  0x12   :  { %80 = vadd.xlane.f32.xlu0 %v79_v6 }
  0x85   :  { %v81_v7 = vpop.xlane.xlu0 %80 }
  0x86   :  { %v82_v8 = vrot.slane %v81_v7, 4 }
  0x88   :  { %v83_v9 = vadd.f32 %v82_v8, %v81_v7 }
  0x8a   :  { %v84_v10 = vrot.slane %v83_v9, 2 }
  0x8c   :  { %v85_v11 = vadd.f32 %v84_v10, %v83_v9 }
  0x8e   :  { %v86_v12 = vrot.slane %v85_v11, 1 }
  0x90   :  { %v87_v13 = vadd.f32 %v86_v12, %v85_v11 }
  0x92   :  { %110 = vpush %v87_v13 }
  0xc3   :  { %s111_s24 = spop %110 }
  0xc4   :  { %v89_v14 = vstv %s111_s24 }
  0xc5   :  { %91 = vst.msk [vmem:[#allocation8] sm:$0x1] %vm90_vm0, %v89_v14 }
  0xc6   :  { %102 = dma.vmem_to_hbm [thread:$0]  %s98_s1, 16, %s100_s23, [#allocation5]  }
  0xc7   :  { %193 = dma.done.wait [#allocation5], 16  }
  0xc8   :  { %194 = vsyncadd [#allocation5], 4294967280 }
  0xc9   :  { %107 = vsyncpa [#allocation4], 1 }
  0xca   :  { %108 = vsyncpa [#allocation7], 1 }
  0xcb   :  { %109 = vsyncpa [#allocation5], 1 }

</bundles_post_ra>
